<compile_context>
chip_gen: v6e
topology: v6e:2x2x1
jax: 0.10.0
libtpu: 0.0.40
codegen_flags: <defaults>
</compile_context>

<pallas_src>
import numpy as np
import jax
import jax.numpy as jnp
from jax.experimental import pallas as pl
from jax.experimental.pallas import tpu as pltpu

PRELU_A = 0.25   # nn.PReLU() default init
EPS = 1e-8
VMEM_LIMIT = 32 * 1024 * 1024


def _cp(semantics):
    return pltpu.CompilerParams(dimension_semantics=semantics,
                                vmem_limit_bytes=VMEM_LIMIT)


def _row_tile(M, cap=2048):
    """Row tile: multiple of 8, >=2 grid steps when M > 8 (keeps both v7x TCs
    busy), capped so per-step overhead is amortized without busting VMEM."""
    if M <= 8:
        return M
    half = -(-M // 2)
    half = -(-half // 8) * 8
    return max(8, min(cap, half))


# ----------------------------------------------------------------------------
# Pallas kernels (hot paths)
# ----------------------------------------------------------------------------
def pallas_linear(x, w, b=None, prelu_a=None, prelu_in=None):
    """y = prelu_a(prelu_in(x) @ w + b).  x:(M,K), w:(K,N) -> (M,N) f32.

    Tiled over M (parallel grid), weight resident, bf16 MXU operands with f32
    accumulation.  prelu_in fuses a PReLU on the input rows before the matmul;
    prelu_a fuses a PReLU on the output.
    """
    M, K = x.shape
    N = w.shape[1]
    xb = x.astype(jnp.bfloat16)
    wb = w.astype(jnp.bfloat16)
    b2 = jnp.zeros((1, N), jnp.float32) if b is None else b.reshape(1, N).astype(jnp.float32)
    a_out = None if prelu_a is None else float(prelu_a)
    a_in = None if prelu_in is None else float(prelu_in)

    tm = _row_tile(M)
    grid = (pl.cdiv(M, tm),)

    def kernel(x_ref, w_ref, b_ref, o_ref):
        xx = x_ref[...]
        if a_in is not None:
            xx = jnp.where(xx >= 0, xx, a_in * xx)
        y = jnp.dot(xx, w_ref[...], preferred_element_type=jnp.float32) + b_ref[...]
        if a_out is not None:
            y = jnp.where(y >= 0.0, y, a_out * y)
        o_ref[...] = y

    return pl.pallas_call(
        kernel,
        grid=grid,
        in_specs=[pl.BlockSpec((tm, K), lambda i: (i, 0)),
                  pl.BlockSpec((K, N), lambda i: (0, 0)),
                  pl.BlockSpec((1, N), lambda i: (0, 0))],
        out_specs=pl.BlockSpec((tm, N), lambda i: (i, 0)),
        out_shape=jax.ShapeDtypeStruct((M, N), jnp.float32),
        compiler_params=_cp(("parallel",)),
        cost_estimate=pl.CostEstimate(
            flops=2 * M * K * N, transcendentals=0,
            bytes_accessed=2 * M * K + 2 * K * N + 4 * N + 4 * M * N),
    )(xb, wb, b2)


def pallas_glu(x, w1, b1, w2, b2):
    """tanh(x@w1+b1) * sigmoid(x@w2+b2).  Two dots sharing the activation tile
    (no mid-vreg split when N is not lane aligned)."""
    M, K = x.shape
    N = w1.shape[1]
    xb = x.astype(jnp.bfloat16)
    w1b = w1.astype(jnp.bfloat16)
    w2b = w2.astype(jnp.bfloat16)
    b1r = b1.reshape(1, N).astype(jnp.float32)
    b2r = b2.reshape(1, N).astype(jnp.float32)

    tm = _row_tile(M)
    grid = (pl.cdiv(M, tm),)

    def kernel(x_ref, w1_ref, b1_ref, w2_ref, b2_ref, o_ref):
        xx = x_ref[...]
        y1 = jnp.dot(xx, w1_ref[...], preferred_element_type=jnp.float32) + b1_ref[...]
        y2 = jnp.dot(xx, w2_ref[...], preferred_element_type=jnp.float32) + b2_ref[...]
        o_ref[...] = jnp.tanh(y1) * jax.nn.sigmoid(y2)

    return pl.pallas_call(
        kernel,
        grid=grid,
        in_specs=[pl.BlockSpec((tm, K), lambda i: (i, 0)),
                  pl.BlockSpec((K, N), lambda i: (0, 0)),
                  pl.BlockSpec((1, N), lambda i: (0, 0)),
                  pl.BlockSpec((K, N), lambda i: (0, 0)),
                  pl.BlockSpec((1, N), lambda i: (0, 0))],
        out_specs=pl.BlockSpec((tm, N), lambda i: (i, 0)),
        out_shape=jax.ShapeDtypeStruct((M, N), jnp.float32),
        compiler_params=_cp(("parallel",)),
        cost_estimate=pl.CostEstimate(
            flops=4 * M * K * N, transcendentals=4 * M * N,
            bytes_accessed=2 * M * K + 4 * K * N + 8 * N + 4 * M * N),
    )(xb, w1b, b1r, w2b, b2r)


def pallas_cos_sim(ctx, tgt, eps=EPS):
    """Sliding cosine similarity.  ctx:(nmic, R, L), tgt:(R, Kw) -> (nmic, R, L-Kw+1).

    The reference frame tgt is shared across mics via the grid (no nmic tiling
    of the data).  Kw (= window) is small, so the shifted-accumulation order is
    the fast one here (full-width FMAs, one dense store).
    """
    nmic, R, L = ctx.shape
    Kw = tgt.shape[1]
    Fo = L - Kw + 1
    tr = _row_tile(R)
    grid = (nmic, pl.cdiv(R, tr))

    def kernel(r_ref, t_ref, o_ref):
        r = r_ref[0]                                   # (tr, L)
        t = t_ref[...]                                 # (tr, Kw)
        num = jnp.zeros((tr, Fo), jnp.float32)
        den = jnp.zeros((tr, Fo), jnp.float32)
        for k in range(Kw):                            # Kw = window (small)
            seg = r[:, k:k + Fo]
            num = num + seg * t[:, k:k + 1]
            den = den + seg * seg
        t_norm = jnp.sqrt(jnp.sum(t * t, axis=1, keepdims=True)) + eps
        o_ref[0] = num / ((jnp.sqrt(den) + eps) * t_norm)

    # TODO(synk): output last dim is filter_dim (33 here) -> masked stores; a
    # lane-dense packed output layout would remove the partial stores.
    return pl.pallas_call(
        kernel,
        grid=grid,
        in_specs=[pl.BlockSpec((1, tr, L), lambda m, j: (m, j, 0)),
                  pl.BlockSpec((tr, Kw), lambda m, j: (j, 0))],
        out_specs=pl.BlockSpec((1, tr, Fo), lambda m, j: (m, j, 0)),
        out_shape=jax.ShapeDtypeStruct((nmic, R, Fo), jnp.float32),
        compiler_params=_cp(("parallel", "parallel")),
    )(ctx.astype(jnp.float32), tgt.astype(jnp.float32))


def pallas_sliding_corr(ctx, filt, nspk):
    """Grouped beamforming correlation.

    ctx:(G, S, L) un-duplicated context; filt:(G*nspk, S, Kf) filters.
    out[g*nspk+s, t, j] = sum_k ctx[g, t, j+k] * filt[g*nspk+s, t, k].

    Loops over the small number of output lags (window) doing full-width
    (Kf-lane) multiplies + one lane reduction each; the context is shared
    across speakers through the index_map (i // nspk).
    """
    G, S, L = ctx.shape
    GS, _, Kf = filt.shape
    W = L - Kf + 1
    ts = S if S <= 256 else 256

    def kernel(a_ref, b_ref, o_ref):
        a = a_ref[0]                                    # (ts, L)
        b = b_ref[0]                                    # (ts, Kf)
        cols = [jnp.sum(a[:, j:j + Kf] * b, axis=1, keepdims=True) for j in range(W)]
        o_ref[0] = jnp.concatenate(cols, axis=1)

    return pl.pallas_call(
        kernel,
        grid=(GS, pl.cdiv(S, ts)),
        in_specs=[pl.BlockSpec((1, ts, L), lambda i, j: (i // nspk, j, 0)),
                  pl.BlockSpec((1, ts, Kf), lambda i, j: (i, j, 0))],
        out_specs=pl.BlockSpec((1, ts, W), lambda i, j: (i, j, 0)),
        out_shape=jax.ShapeDtypeStruct((GS, S, W), jnp.float32),
        compiler_params=_cp(("parallel", "parallel")),
    )(ctx.astype(jnp.float32), filt.astype(jnp.float32))


def _gn_tile(BS, S, C, budget=2 << 20):
    per_row = max(S * C * 4, 1)
    tb = max(1, min(BS, budget // per_row))
    if BS >= 2:
        tb = min(tb, (BS + 1) // 2)     # >= 2 grid steps for dual-TC chips
    return tb


def pallas_groupnorm(x, gamma, beta, residual=None, eps=EPS):
    """GroupNorm(1, C), channels-LAST: x:(BS, S, C); stats over (S, C) per
    sample, per-channel affine on the last axis, optional fused residual add
    (out = residual + norm(x)).  Batched over sample tiles."""
    BS, S, C = x.shape
    g2 = gamma.reshape(1, C).astype(jnp.float32)
    b2 = beta.reshape(1, C).astype(jnp.float32)
    tb = _gn_tile(BS, S, C)
    grid = (pl.cdiv(BS, tb),)
    has_res = residual is not None

    def kernel(*refs):
        if has_res:
            x_ref, g_ref, b_ref, r_ref, o_ref = refs
        else:
            x_ref, g_ref, b_ref, o_ref = refs
        xv = x_ref[...]                                 # (tb, S, C)
        m = jnp.mean(xv, axis=(1, 2), keepdims=True)
        v = jnp.mean(jnp.square(xv - m), axis=(1, 2), keepdims=True)
        y = (xv - m) * jax.lax.rsqrt(v + eps)
        y = y * g_ref[...][None] + b_ref[...][None]
        if has_res:
            y = y + r_ref[...]
        o_ref[...] = y

    # TODO(synk): at very long S the (tb, S, C) slab should be S-tiled with a
    # running sum / sum-of-squares pass to stay inside v7x's smaller VMEM.
    in_specs = [pl.BlockSpec((tb, S, C), lambda i: (i, 0, 0)),
                pl.BlockSpec((1, C), lambda i: (0, 0)),
                pl.BlockSpec((1, C), lambda i: (0, 0))]
    args = [x.astype(jnp.float32), g2, b2]
    if has_res:
        in_specs.append(pl.BlockSpec((tb, S, C), lambda i: (i, 0, 0)))
        args.append(residual.astype(jnp.float32))

    return pl.pallas_call(
        kernel,
        grid=grid,
        in_specs=in_specs,
        out_specs=pl.BlockSpec((tb, S, C), lambda i: (i, 0, 0)),
        out_shape=jax.ShapeDtypeStruct((BS, S, C), jnp.float32),
        compiler_params=_cp(("parallel",)),
    )(*args)


def pallas_lstm_scan_bidir(xp, wh, H):
    """Merged forward+backward LSTM recurrence inside one Pallas kernel.

    xp: (bsz, seq, 8H) gate-interleaved input projection (+ biases), columns
        ordered [i_f,i_b, f_f,f_b, g_f,g_b, o_f,o_b]; the *_b columns are
        already time-reversed by the wrapper (both directions run forward).
    wh: (2H, 8H) block-diagonal recurrent weight (bf16), same column order,
        rows = [h_f | h_b].
    Returns hs: (bsz, seq, 2H) = [h_f(t) | h_b(seq-1-t)].
    """
    bsz, seq, H8 = xp.shape
    H2 = 2 * H
    xp_t = jnp.swapaxes(xp, 0, 1).astype(jnp.float32)          # (seq, bsz, 8H)

    tb = _row_tile(bsz, cap=256)
    nb = pl.cdiv(bsz, tb)
    ts = min(seq, max(1, (4 << 20) // (tb * H8 * 8)))          # seq chunk (VMEM budget)
    ns = pl.cdiv(seq, ts)

    def kernel(xp_ref, w_ref, o_ref, h_sc, c_sc):
        @pl.when(pl.program_id(1) == 0)
        def _():
            h_sc[...] = jnp.zeros_like(h_sc)
            c_sc[...] = jnp.zeros_like(c_sc)

        w = w_ref[...]

        def step(t, carry):
            h = h_sc[...]
            c = c_sc[...]
            gates = xp_ref[t] + jnp.dot(h.astype(jnp.bfloat16), w,
                                        preferred_element_type=jnp.float32)
            i = jax.nn.sigmoid(gates[:, :H2])
            f = jax.nn.sigmoid(gates[:, H2:2 * H2])
            g = jnp.tanh(gates[:, 2 * H2:3 * H2])
            o = jax.nn.sigmoid(gates[:, 3 * H2:])
            c_new = f * c + i * g
            h_new = o * jnp.tanh(c_new)
            h_sc[...] = h_new
            c_sc[...] = c_new
            # TODO(synk): 2H = 32-lane store per timestep; packing multiple
            # timesteps into a 128-wide slab before the store would make it
            # fully lane-dense.
            o_ref[t] = h_new
            return carry

        jax.lax.fori_loop(0, ts, step, 0)

    hs_t = pl.pallas_call(
        kernel,
        grid=(nb, ns),
        in_specs=[pl.BlockSpec((ts, tb, H8), lambda i, j: (j, i, 0)),
                  pl.BlockSpec((H2, H8), lambda i, j: (0, 0))],
        out_specs=pl.BlockSpec((ts, tb, H2), lambda i, j: (j, i, 0)),
        out_shape=jax.ShapeDtypeStruct((seq, bsz, H2), jnp.float32),
        scratch_shapes=[pltpu.VMEM((tb, H2), jnp.float32),
                        pltpu.VMEM((tb, H2), jnp.float32)],
        compiler_params=_cp(("parallel", "arbitrary")),
    )(xp_t, wh.astype(jnp.bfloat16))

    return jnp.swapaxes(hs_t, 0, 1)                            # (bsz, seq, 2H)


def bidir_lstm(x, p):
    """PyTorch-style 1-layer bidirectional LSTM (batch_first) + Linear proj,
    using pre-packed weights (single (D,8H) input projection, merged fwd/bwd
    recurrence in one Pallas scan)."""
    bsz, seq, D = x.shape
    H = p['H']
    xp = pallas_linear(x.reshape(-1, D), p['wx'], p['bx']).reshape(bsz, seq, 8 * H)
    # time-reverse the backward-direction gate columns so both directions scan forward
    xp = jnp.where(p['rev_mask'], xp[:, ::-1, :], xp)
    hs = pallas_lstm_scan_bidir(xp, p['wh'], H)                # (bsz, seq, 2H)
    rnn_out = jnp.concatenate([hs[:, :, :H], hs[:, ::-1, H:]], axis=-1)
    return pallas_linear(rnn_out.reshape(-1, 2 * H), p['proj_w'],
                         p['proj_b']).reshape(bsz, seq, D)


# ----------------------------------------------------------------------------
# Plain-JAX glue (padding / segmentation), channels-last
# ----------------------------------------------------------------------------
def pad_input(x, window):
    B, M, T = x.shape
    stride = window // 2
    rest = window - (stride + T % window) % window
    if rest > 0:
        x = jnp.concatenate([x, jnp.zeros((B, M, rest), x.dtype)], axis=2)
    pad_aux = jnp.zeros((B, M, stride), x.dtype)
    return jnp.concatenate([pad_aux, x, pad_aux], axis=2), rest


def seg_signal_context(x, window, context):
    # TODO(synk): the context-window gather still materializes an overlapped
    # (B, M, nchunk, L_ctx) tensor in HBM; folding it into a frame-indexed
    # BlockSpec on the encoder kernel would remove the duplicated traffic.
    xp, rest = pad_input(x, window)
    B, M, nsample = xp.shape
    stride = window // 2
    pad_ctx = jnp.zeros((B, M, context), xp.dtype)
    xp = jnp.concatenate([pad_ctx, xp, pad_ctx], axis=2)
    nchunk = 2 * nsample // window - 1
    L = 2 * context + window
    idx = np.arange(nchunk)[:, None] * stride + np.arange(L)[None, :]
    chunks = xp[:, :, idx]                                  # (B, M, nchunk, L)
    center = chunks[:, :, :, context:context + window]      # (B, M, nchunk, window)
    return center, chunks, rest


def split_feature_cl(x, seg_size):
    """x: (BS, L, D) channels-last -> (BS, seg_size, K, D), rest."""
    BS, L, D = x.shape
    stride = seg_size // 2
    rest = seg_size - (stride + L % seg_size) % seg_size
    if rest > 0:
        x = jnp.concatenate([x, jnp.zeros((BS, rest, D), x.dtype)], axis=1)
    pad_aux = jnp.zeros((BS, stride, D), x.dtype)
    x = jnp.concatenate([pad_aux, x, pad_aux], axis=1)
    s1 = x[:, :-stride].reshape(BS, -1, seg_size, D)
    s2 = x[:, stride:].reshape(BS, -1, seg_size, D)
    segs = jnp.stack([s1, s2], axis=2)                       # (BS, n, 2, seg, D)
    segs = segs.transpose(0, 3, 1, 2, 4).reshape(BS, seg_size, -1, D)
    return segs, rest


def merge_feature_cl(x, rest):
    """x: (BS, seg_size, K, D) channels-last -> (BS, L, D)."""
    BS, seg, K, D = x.shape
    stride = seg // 2
    xt = x.transpose(0, 2, 1, 3).reshape(BS, K // 2, seg * 2, D)
    x1 = xt[:, :, :seg, :].reshape(BS, -1, D)[:, stride:, :]
    x2 = xt[:, :, seg:, :].reshape(BS, -1, D)[:, :-stride, :]
    out = x1 + x2
    if rest > 0:
        out = out[:, :-rest, :]
    return out


# ----------------------------------------------------------------------------
# DPRNN_TAC / BF_module / FaSNet_TAC forward (channels-last)
# ----------------------------------------------------------------------------
def dprnn_tac(x, mic_mask, params, cfg, fixed):
    # x: (B, ch, d1, d2, N) channels-last
    B, ch, d1, d2, N = x.shape
    H = cfg['hidden_dim']
    nspk = cfg['nspk']
    BS = B * ch
    output = x.reshape(BS, d1, d2, N)

    for lp in params['dprnn_layers']:
        # intra-segment (row) RNN over d1 (residual add fused into the groupnorm)
        row_in = output.transpose(0, 2, 1, 3).reshape(BS * d2, d1, N)
        row_out = bidir_lstm(row_in, lp['row'])
        row_out = row_out.reshape(BS, d2, d1, N).transpose(0, 2, 1, 3)
        output = pallas_groupnorm(row_out.reshape(BS, d1 * d2, N),
                                  lp['row_norm_g'], lp['row_norm_b'],
                                  residual=output.reshape(BS, d1 * d2, N)
                                  ).reshape(BS, d1, d2, N)

        # inter-segment (col) RNN over d2 — native layout, no transpose
        col_in = output.reshape(BS * d1, d2, N)
        col_out = bidir_lstm(col_in, lp['col'])
        col_out = col_out.reshape(BS, d1, d2, N)
        output = pallas_groupnorm(col_out.reshape(BS, d1 * d2, N),
                                  lp['col_norm_g'], lp['col_norm_b'],
                                  residual=output.reshape(BS, d1 * d2, N)
                                  ).reshape(BS, d1, d2, N)

        # TAC: transform -> average -> concatenate
        ch_in = output.reshape(B, ch, d1, d2, N).transpose(0, 2, 3, 1, 4).reshape(-1, N)
        ch_out = pallas_linear(ch_in, lp['tr_w'], lp['tr_b'], prelu_a=PRELU_A)
        ch_out = ch_out.reshape(B, d1 * d2, ch, 3 * H)
        if fixed:
            ch_mean = ch_out.mean(axis=2).reshape(B * d1 * d2, 3 * H)
        else:
            cnt = jnp.sum(mic_mask, axis=1)
            ch_mean = (ch_out * mic_mask[:, None, :, None]).sum(axis=2) / cnt[:, None, None]
            ch_mean = ch_mean.reshape(B * d1 * d2, 3 * H)
        ch_out = ch_out.reshape(B * d1 * d2, ch, 3 * H)
        ch_mean = pallas_linear(ch_mean, lp['av_w'], lp['av_b'], prelu_a=PRELU_A)
        ch_mean = jnp.broadcast_to(ch_mean[:, None, :], ch_out.shape)
        ch_cat = jnp.concatenate([ch_out, ch_mean], axis=2).reshape(-1, 6 * H)
        ch_o = pallas_linear(ch_cat, lp['cc_w'], lp['cc_b'], prelu_a=PRELU_A)
        ch_o = ch_o.reshape(B, d1, d2, ch, N).transpose(0, 3, 1, 2, 4).reshape(BS, d1, d2, N)
        output = pallas_groupnorm(ch_o.reshape(BS, d1 * d2, N),
                                  lp['ch_norm_g'], lp['ch_norm_b'],
                                  residual=output.reshape(BS, d1 * d2, N)
                                  ).reshape(BS, d1, d2, N)

    # output layer: PReLU -> 1x1 Conv2d (PReLU fused into the matmul kernel)
    out = pallas_linear(output.reshape(-1, N), params['dprnn_out_w'],
                        params['dprnn_out_b'], prelu_in=PRELU_A)          # (BS*d1*d2, N*nspk)
    out = out.reshape(BS, d1, d2, nspk, N).transpose(0, 3, 1, 2, 4)
    return out.reshape(BS * nspk, d1, d2, N)                              # channels-last


def bf_module(input_feature, num_mic, params, cfg, fixed):
    # input_feature: (B, ch, seq, N_in) channels-last
    B, ch, seq, N_in = input_feature.shape
    F = cfg['feature_dim']
    nspk = cfg['nspk']
    seg = cfg['segment_size']
    fd = cfg['filter_dim']

    # BN: 1x1 Conv1d (no bias) as channels-last matmul
    feat = pallas_linear(input_feature.reshape(-1, N_in), params['bn_w'])
    enc_feature = feat.reshape(B * ch, seq, F)

    enc_segments, enc_rest = split_feature_cl(enc_feature, seg)           # (B*ch, seg, K, F)
    K = enc_segments.shape[2]
    enc_segments = enc_segments.reshape(B, ch, seg, K, F)

    mic_mask = None
    if not fixed:
        mic_mask = (jnp.arange(ch)[None, :] < num_mic[:, None]).astype(jnp.float32)

    dp_out = dprnn_tac(enc_segments, mic_mask, params, cfg, fixed)        # (B*ch*nspk, seg, K, F)
    merged = merge_feature_cl(dp_out, enc_rest)                           # (B*ch*nspk, seq, F)

    bf = pallas_glu(merged.reshape(-1, F), params['out_w'], params['out_b'],
                    params['gate_w'], params['gate_b'])                   # (rows, fd)
    return bf.reshape(B, ch, nspk, seq, fd)


def fasnet_tac_forward(x, num_mic, params, cfg):
    B, nmic, T = x.shape
    window, context, stride = cfg['window'], cfg['context'], cfg['stride']
    L_ctx = 2 * context + window
    fd, E, nspk = cfg['filter_dim'], cfg['enc_dim'], cfg['nspk']
    # static host-side decision (mirrors `num_mic.max() == 0` in the reference)
    fixed = bool(np.asarray(num_mic).max() == 0)

    all_seg, all_mic_context, rest = seg_signal_context(x, window, context)
    seq = all_seg.shape[2]

    # encoder (Conv1d kernel == input length -> matmul) + GroupNorm(1, enc_dim),
    # kept channels-last end to end.
    enc = pallas_linear(all_mic_context.reshape(-1, L_ctx), params['enc_w'])
    enc = enc.reshape(B * nmic, seq, E)
    enc = pallas_groupnorm(enc, params['enc_ln_g'], params['enc_ln_b'])
    enc_output = enc.reshape(B, nmic, seq, E)

    # cosine similarity between each mic context and the reference-mic frame
    ref_seg = all_seg[:, 0].reshape(B * seq, window)
    all_context = all_mic_context.transpose(1, 0, 2, 3).reshape(nmic, B * seq, L_ctx)
    cos = pallas_cos_sim(all_context, ref_seg)                            # (nmic, B*seq, fd)
    all_cos_sim = cos.reshape(nmic, B, seq, fd).transpose(1, 0, 2, 3)     # (B, nmic, seq, fd)

    input_feature = jnp.concatenate([enc_output, all_cos_sim], axis=3)    # (B, nmic, seq, E+fd)
    all_filter = bf_module(input_feature, num_mic, params, cfg, fixed)    # (B, nmic, nspk, seq, fd)

    # grouped beamforming conv: per (b, mic, spk, frame) sliding correlation;
    # context deduplicated across speakers via the index_map.
    ctx = all_mic_context.reshape(B * nmic, seq, L_ctx)
    filt = all_filter.reshape(B * nmic * nspk, seq, fd)
    bf_out = pallas_sliding_corr(ctx, filt, nspk)                         # (B*nmic*nspk, seq, window)

    # overlap-and-add
    bs = B * nmic * nspk
    sig = bf_out.reshape(bs, -1, window * 2)
    sig1 = sig[:, :, :window].reshape(bs, 1, -1)[:, :, stride:]
    sig2 = sig[:, :, window:].reshape(bs, 1, -1)[:, :, :-stride]
    bf_signal = sig1 + sig2
    if rest > 0:
        bf_signal = bf_signal[:, :, :-rest]
    bf_signal = bf_signal.reshape(B, nmic, nspk, -1)

    if fixed:
        bf_signal = bf_signal.mean(axis=1)
    else:
        mask = (jnp.arange(nmic)[None, :] < num_mic[:, None]).astype(jnp.float32)
        cnt = jnp.sum(mask, axis=1)
        bf_signal = (bf_signal * mask[:, :, None, None]).sum(axis=1) / cnt[:, None, None]
    return bf_signal    # (B, nspk, T)


# ----------------------------------------------------------------------------
# Parameters: PyTorch-shaped init + one-time packing (hoisted out of forward)
# ----------------------------------------------------------------------------
class ParamInit:
    def __init__(self, seed):
        self.key = jax.random.PRNGKey(seed)

    def __call__(self, *shape, scale=0.1):
        self.key, sub = jax.random.split(self.key)
        return jax.random.normal(sub, shape, jnp.float32) * scale


def make_params(cfg, seed=42):
    pi = ParamInit(seed)
    H, F, E = cfg['hidden_dim'], cfg['feature_dim'], cfg['enc_dim']
    L_ctx = 2 * cfg['context'] + cfg['window']
    fd = cfg['filter_dim']

    def lstm_params():
        return {'Wih_f': pi(4 * H, F), 'Whh_f': pi(4 * H, H), 'bih_f': pi(4 * H), 'bhh_f': pi(4 * H),
                'Wih_b': pi(4 * H, F), 'Whh_b': pi(4 * H, H), 'bih_b': pi(4 * H), 'bhh_b': pi(4 * H),
                'proj_w': pi(F, 2 * H), 'proj_b': pi(F)}

    layers = []
    for _ in range(cfg['layer']):
        layers.append({
            'row': lstm_params(), 'col': lstm_params(),
            'tr_w': pi(3 * H, F), 'tr_b': pi(3 * H),
            'av_w': pi(3 * H, 3 * H), 'av_b': pi(3 * H),
            'cc_w': pi(F, 6 * H), 'cc_b': pi(F),
            'row_norm_g': jnp.ones((F,), jnp.float32), 'row_norm_b': jnp.zeros((F,), jnp.float32),
            'col_norm_g': jnp.ones((F,), jnp.float32), 'col_norm_b': jnp.zeros((F,), jnp.float32),
            'ch_norm_g': jnp.ones((F,), jnp.float32), 'ch_norm_b': jnp.zeros((F,), jnp.float32),
        })

    return {
        'enc_w': pi(E, L_ctx),
        'enc_ln_g': jnp.ones((E,), jnp.float32), 'enc_ln_b': jnp.zeros((E,), jnp.float32),
        'bn_w': pi(F, fd + E),
        'dprnn_layers': layers,
        'dprnn_out_w': pi(F * cfg['nspk'], F), 'dprnn_out_b': pi(F * cfg['nspk']),
        'out_w': pi(fd, F), 'out_b': pi(fd),
        'gate_w': pi(fd, F), 'gate_b': pi(fd),
    }


def pack_params(params, cfg):
    """One-time weight packing: transposes, gate interleave, block-diag Whh,
    bias merges, bf16 casts.  Run once; the forward consumes packed weights."""
    H = cfg['hidden_dim']

    def pack_lstm(p):
        wf, wb = p['Wih_f'].T, p['Wih_b'].T                       # (D, 4H)
        wx = jnp.concatenate(
            [jnp.concatenate([wf[:, g * H:(g + 1) * H], wb[:, g * H:(g + 1) * H]], axis=1)
             for g in range(4)], axis=1)                          # (D, 8H) gate-interleaved
        bfv = p['bih_f'] + p['bhh_f']
        bbv = p['bih_b'] + p['bhh_b']
        bx = jnp.concatenate(
            [jnp.concatenate([bfv[g * H:(g + 1) * H], bbv[g * H:(g + 1) * H]]) for g in range(4)])
        whf, whb = p['Whh_f'].T, p['Whh_b'].T                     # (H, 4H)
        wh = jnp.zeros((2 * H, 8 * H), jnp.float32)
        for g in range(4):
            wh = wh.at[:H, 2 * g * H:(2 * g + 1) * H].set(whf[:, g * H:(g + 1) * H])
            wh = wh.at[H:, (2 * g + 1) * H:(2 * g + 2) * H].set(whb[:, g * H:(g + 1) * H])
        rev_mask = jnp.asarray(
            np.tile(np.concatenate([np.zeros(H, bool), np.ones(H, bool)]), 4))
        return {'H': H,
                'wx': wx.astype(jnp.bfloat16), 'bx': bx.astype(jnp.float32),
                'wh': wh.astype(jnp.bfloat16), 'rev_mask': rev_mask,
                'proj_w': p['proj_w'].T.astype(jnp.bfloat16),
                'proj_b': p['proj_b'].astype(jnp.float32)}

    layers = []
    for lp in params['dprnn_layers']:
        layers.append({
            'row': pack_lstm(lp['row']), 'col': pack_lstm(lp['col']),
            'tr_w': lp['tr_w'].T.astype(jnp.bfloat16), 'tr_b': lp['tr_b'],
            'av_w': lp['av_w'].T.astype(jnp.bfloat16), 'av_b': lp['av_b'],
            'cc_w': lp['cc_w'].T.astype(jnp.bfloat16), 'cc_b': lp['cc_b'],
            'row_norm_g': lp['row_norm_g'], 'row_norm_b': lp['row_norm_b'],
            'col_norm_g': lp['col_norm_g'], 'col_norm_b': lp['col_norm_b'],
            'ch_norm_g': lp['ch_norm_g'], 'ch_norm_b': lp['ch_norm_b'],
        })

    return {
        'enc_w': params['enc_w'].T.astype(jnp.bfloat16),
        'enc_ln_g': params['enc_ln_g'], 'enc_ln_b': params['enc_ln_b'],
        'bn_w': params['bn_w'].T.astype(jnp.bfloat16),
        'dprnn_layers': layers,
        'dprnn_out_w': params['dprnn_out_w'].T.astype(jnp.bfloat16),
        'dprnn_out_b': params['dprnn_out_b'],
        'out_w': params['out_w'].T.astype(jnp.bfloat16), 'out_b': params['out_b'],
        'gate_w': params['gate_w'].T.astype(jnp.bfloat16), 'gate_b': params['gate_b'],
    }


if __name__ == "__main__":
    # small FaSNet_TAC config: sr=1000, win_len=4ms, context_len=16ms
    sr, win_len, context_len = 1000, 4, 16
    window = int(sr * win_len / 1000)         # 4
    context = int(sr * context_len / 1000)    # 16
    cfg = dict(window=window, context=context, stride=window // 2,
               filter_dim=2 * context + 1, enc_dim=16, feature_dim=16,
               hidden_dim=16, layer=2, segment_size=4, nspk=2)

    B, nmic, T = 2, 2, 32
    x = jax.random.normal(jax.random.PRNGKey(0), (B, nmic, T), jnp.float32)
    num_mic = jnp.zeros((B,), jnp.int32)      # fixed-geometry array path

    params = pack_params(make_params(cfg, seed=42), cfg)
    out = fasnet_tac_forward(x, num_mic, params, cfg)
    out = jax.block_until_ready(out)

    assert out.shape == (B, cfg['nspk'], T), out.shape
    assert bool(jnp.all(jnp.isfinite(out)))
    print("KERNEL_OK")
</pallas_src>

<mosaic_0001>
module attributes {stable_mosaic.version = 11 : i64} {
  func.func @kernel(%arg0: i32, %arg1: memref<40x36xbf16, #tpu.memory_space<vmem>>, %arg2: memref<36x16xbf16, #tpu.memory_space<vmem>>, %arg3: memref<1x16xf32, #tpu.memory_space<vmem>>, %arg4: memref<40x16xf32, #tpu.memory_space<vmem>>) attributes {dimension_semantics = [#tpu.dimension_semantics<parallel>], iteration_bounds = array<i64: 2>, scalar_prefetch = 0 : i64, scratch_operands = 0 : i64, tpu.core_type = #tpu.core_type<tc>, window_params = [{transform_indices = @transform_0, window_bounds = array<i64: 40, 36>}, {pipeline_mode = #tpu.pipeline_mode<synchronous>, transform_indices = @transform_1, window_bounds = array<i64: 36, 16>}, {pipeline_mode = #tpu.pipeline_mode<synchronous>, transform_indices = @transform_2, window_bounds = array<i64: 1, 16>}, {transform_indices = @transform_3, window_bounds = array<i64: 40, 16>}]} {
    %c0 = arith.constant 0 : index
    %c0_0 = arith.constant 0 : index
    %0 = vector.load %arg1[%c0, %c0_0] : memref<40x36xbf16, #tpu.memory_space<vmem>>, vector<40x36xbf16>
    %c0_1 = arith.constant 0 : index
    %c0_2 = arith.constant 0 : index
    %1 = vector.load %arg2[%c0_1, %c0_2] : memref<36x16xbf16, #tpu.memory_space<vmem>>, vector<36x16xbf16>
    %cst = arith.constant dense<0.000000e+00> : vector<40x16xf32>
    %2 = tpu.matmul %0, %1, %cst {dimension_numbers = #tpu.dot_dimension_numbers<[1], [0], [0], [1], [0, 0, 1, 1], [], []>} : vector<40x36xbf16>, vector<36x16xbf16>, vector<40x16xf32> -> vector<40x16xf32>
    %c0_3 = arith.constant 0 : index
    %c0_4 = arith.constant 0 : index
    %3 = vector.load %arg3[%c0_3, %c0_4] : memref<1x16xf32, #tpu.memory_space<vmem>>, vector<1x16xf32>
    %4 = vector.broadcast %3 : vector<1x16xf32> to vector<40x16xf32>
    %5 = arith.addf %2, %4 : vector<40x16xf32>
    %c0_5 = arith.constant 0 : index
    %c0_6 = arith.constant 0 : index
    %6 = vector.load %arg4[%c0_5, %c0_6] : memref<40x16xf32, #tpu.memory_space<vmem>>, vector<40x16xf32>
    tpu.vector_store %arg4[%c0_5, %c0_6], %5 {strides = array<i32>} : memref<40x16xf32, #tpu.memory_space<vmem>>, vector<40x16xf32>,
    return
  }
  func.func @transform_0(%arg0: i32) -> (i32, i32) {
    %c0_i32 = arith.constant 0 : i32
    %c0_i32_0 = arith.constant 0 : i32
    return %arg0, %c0_i32 : i32, i32
  }
  func.func @transform_1(%arg0: i32) -> (i32, i32) {
    %c0_i32 = arith.constant 0 : i32
    %c0_i32_0 = arith.constant 0 : i32
    %c0_i32_1 = arith.constant 0 : i32
    return %c0_i32, %c0_i32_0 : i32, i32
  }
  func.func @transform_2(%arg0: i32) -> (i32, i32) {
    %c0_i32 = arith.constant 0 : i32
    %c0_i32_0 = arith.constant 0 : i32
    %c0_i32_1 = arith.constant 0 : i32
    return %c0_i32, %c0_i32_0 : i32, i32
  }
  func.func @transform_3(%arg0: i32) -> (i32, i32) {
    %c0_i32 = arith.constant 0 : i32
    %c0_i32_0 = arith.constant 0 : i32
    return %arg0, %c0_i32 : i32, i32
  }
}

</mosaic_0001>

<bundles_post_ra>
// kernel: tpu_custom_call.1
= control target key start
LH: loop header
LB: loop body
LE: loop exit
PB: predicated region body
PF: predicated region fallthrough
CT: control target
= control target key end

     0   :  { %s818_s12 = smov 0   ;;  %s820_s13 = smov 0   ;;  %s939_s0 = inlined_call_operand.vmem [shape: bf16[72,36], index: 0, kind: input, shape index: {}]   ;;  %s940_s1 = inlined_call_operand.vmem [shape: bf16[36,16], index: 1, kind: input, shape index: {}]   ;;  %s941_s2 = inlined_call_operand.vmem [shape: f32[1,16], index: 2, kind: input, shape index: {}]   ;;  %s942_s3 = inlined_call_operand.vmem [shape: f32[72,16], index: 3, kind: output, shape index: {}]  }
   0x1   :  { %s822_s14 = smov 0  }
   0x2 LB: > { %s831_s15 = sadd.s32 4294967295, %s762_s14   ;;  %s833_s16 = sadd.s32 1, %s762_s14   ;;  %s762_s14 = sphi %s822_s14, %s949_s14   ;;  %s758_s13 = sphi %s820_s13, %s948_s13   ;;  %s754_s12 = sphi %s818_s12, %s947_s12  }
   0x3   : > { %s85_s17 = ssub.s32 %s762_s14, %s833_s16  ;;  %s88_s18 = sadd.s32 1, %s758_s13 }
   0x4   : > { %p86_p0 = scmp.eq.s32.totalorder %s85_s17, 0  ;;  %p98_p1 = scmp.ne.s32.totalorder %s758_s13, %s754_s12 }
   0x5   : > { %p99_p2 = scmp.eq.s32.totalorder %s831_s15, 1  ;;  %p551_p3 = scmp.ge.s32.totalorder %s762_s14, 1 }
   0x6   : > { %s841_s19 = scalar_select %p86_p0, %s758_s13, %s88_s18  }
   0x7   : > { %p843_p4 = por %p99_p2, %p98_p1  ;;  %p146_p5 = scmp.lt.s32.totalorder %s762_s14, 3 }
   0x9   : > { %p147_p6 = pnand %p551_p3, %p146_p5 }
   0xa   : > { %s854_s25 = smul.u32 (!%p147_p6), 5, %s831_s15  ;;  %s170_s6 = sand.u32 (!%p147_p6), 1, %s754_s12  }
   0xb   : > { %150 = sbr.rel (%p147_p6) target bundleno = 289 (0x121), region = 32 }
   0xc   : > { %p178_p7 = scmp.lt.s32.totalorder (!%p147_p6), %s854_s25, 8  ;;  %s606_s7 = smul.u32 (!%p147_p6), 40, %s170_s6 }
   0xe   : > { %s871_s10 = scalar_lea.vmem (!%p147_p6), [#allocation2], %s606_s7  }
  0x10   : > { %v698_v0 = vld [vmem:[%s940_s1 + $0x10] ss:$0 sps:$4 sm:$0x33]   ;;  %v796_v1 = vmov 0.0   ;;  %vm248_vm0 = vcmask 1041408   ;;  %v699_v3 = vld [vmem:[%s940_s1 + $0x8] sm:$0xff]  }
  0x11   : > { %600 = vmatprep.subr.bf16.mxu1 %v796_v1  ;;  %582 = vmatprep.subr.bf16.mxu0 %v796_v1  ;;  %v250_v2 = vsel %vm248_vm0, %v698_v0, 0  ;;  %vm797_vm1 = vmmov 0   ;;  %v700_v4 = vld [vmem:[%s940_s1] sm:$0xff]   ;;  %s179_s28 = scalar_select %p178_p7, %s854_s25, 8  ;;  %vm238_vm2 = vcmask 293888   ;;  %vm308_vm3 = vcmask 130048  }
  0x12   : > { %603 = vmatpush3.bf16.msra.mxu1 %v250_v2  ;;  %583 = vmatpush3.bf16.msra.mxu0 %v250_v2  ;;  %v553_v8 = vld [vmem:[%s941_s2] ss:$0 sm:$0xff]  ;;  %s322_s11 = ssub.s32 (%p843_p4), 9, %s854_s25  ;;  %s575_s12 = smul.u32 (%p843_p4), 40, %s831_s15 }
  0x13   : > { %601 = vmatprep.subr.bf16.mxu1 %v796_v1  ;;  %584 = vmatprep.subr.bf16.mxu0 %v796_v1  ;;  %s552_s29 = sshll.u32 %s179_s28, 2  ;;  %p323_p8 = scmp.lt.s32.totalorder (%p843_p4), %s322_s11, 5 }
  0x14   : > { %592 = vmatprep.mubr.msk.bf16.mxu1 %vm797_vm1, %v796_v1  ;;  %588 = vmatprep.mubr.msk.bf16.mxu0 %vm797_vm1, %v796_v1  ;;  %s181_s5 = scalar_lea.vmem %s939_s0, %s552_s29  ;;  %s890_s18 = scalar_lea.vmem (%p843_p4), %s942_s3, %s575_s12  }
  0x15   : > { %v701_v5 = vld [vmem:[%s181_s5 + $0x8] sm:$0xff]   ;;  %v702_v6 = vld [vmem:[%s181_s5] sm:$0xff]   ;;  %v703_v7 = vld [vmem:[%s181_s5 + $0x10] ss:$0 sps:$4 sm:$0xff]  }
  0x16   : > { %604 = vmatpush3.bf16.msra.mxu1 %v699_v3  ;;  %585 = vmatpush3.bf16.msra.mxu0 %v699_v3 }
  0x17   : > { %602 = vmatprep.subr.bf16.mxu1 %v796_v1  ;;  %586 = vmatprep.subr.bf16.mxu0 %v796_v1 }
  0x1a   : > { %605 = vmatpush3.bf16.msra.mxu1 %v700_v4  ;;  %587 = vmatpush3.bf16.msra.mxu0 %v700_v4 }
  0x1d   : > { %593 = vmatmul.mubr.msk.bf16.vlgmr.msra.gmra.mxu1 %vm238_vm2, %v701_v5  ;;  %589 = vmatmul.mubr.msk.bf16.vlgmr.msra.gmra.mxu0 %vm238_vm2, %v702_v6 }
  0x1e   : > { %596 = vmatprep.mubr.msk.bf16.mxu1 %vm797_vm1, %v796_v1 }
  0x25   : > { %597 = vmatmul.mubr.msk.bf16.gmra.mxu1 %vm238_vm2, %v703_v7 }
  0xdd   : > { %v294_v9 = vpop.f32.mrf.mxu1  ;;  %v286_v10 = vpop.f32.mrf.mxu0 }
  0xde   : > { %v295_v11 = vadd.f32 %v553_v8, %v294_v9  ;;  %v287_v12 = vadd.f32 %v553_v8, %v286_v10 }
  0xdf   : > { %v594_v13 = vpop.f32.mrf.mxu1  ;;  %v590_v14 = vpop.f32.mrf.mxu0 }
  0xe0   : > { %311 = vst.msk [vmem:[%s871_s10 + $0x10] sm:$0xff] %vm308_vm3, %v295_v11  ;;  %309 = vst.msk [vmem:[%s871_s10] sm:$0xff] %vm308_vm3, %v287_v12 }
  0xe1   : > { %v297_v15 = vpop.f32.mrf.mxu1  ;;  %v289_v16 = vpop.f32.mrf.mxu0 }
  0xe2   : > { %v298_v17 = vadd.f32 %v553_v8, %v297_v15  ;;  %v290_v18 = vadd.f32 %v553_v8, %v289_v16 }
  0xe3   : > { %v595_v19 = vpop.f32.mrf.mxu1  ;;  %v591_v20 = vpop.f32.mrf.mxu0 }
  0xe4   : > { %312 = vst.msk [vmem:[%s871_s10 + $0x18] sm:$0xff] %vm308_vm3, %v298_v17  ;;  %310 = vst.msk [vmem:[%s871_s10 + $0x8] sm:$0xff] %vm308_vm3, %v290_v18 }
  0xe5   : > { %v302_v21 = vpop.f32.mrf.mxu1 }
  0xe6   : > { %v303_v22 = vadd.f32 %v553_v8, %v302_v21 }
  0xe7   : > { %v598_v23 = vpop.f32.mrf.mxu1  ;;  %320 = sbr.rel (!%p843_p4) target bundleno = 289 (0x121), region = 36 }
  0xe8   : > { %313 = vst.msk [vmem:[%s871_s10 + $0x20] sm:$0xff] %vm308_vm3, %v303_v22 }
  0xe9   : > { %v305_v24 = vpop.f32.mrf.mxu1 }
  0xeb   : > { %v599_v25 = vpop.f32.mrf.mxu1 }
  0xec   : > { %s951_s11 = smov (!%p323_p8, %s322_s11), 5 }
  0xed   : > { %s563_s21 = sshll.u32 %s951_s11, 7 }
  0xee   : > { %p566_p9 = scmp.eq.s32.totalorder %s563_s21, 0 }
  0xef   : > { %704 = sdivrem.u32 (!%p566_p9), %s951_s11, 5 }
  0xf0   : > { %331 = sbr.rel (%p566_p9) target bundleno = 289 (0x121), region = 40 }
  0xf8   : > { %s896_s20 = spop.drf %704 }
  0xf9   : > { %p567_p10 = scmp.le.s32.totalorder %s896_s20, 0 }
  0xfa   : > { %s944_s15 = smov (!%p567_p10), %s890_s18  ;;  %s945_s22 = smov (!%p567_p10), %s871_s10 }
  0xfb   : > { %504 = sbr.rel (%p567_p10) target bundleno = 264 (0x108), region = 116  ;;  %s905_s23 = smov (!%p567_p10), 0  }
  0xfc   : > { %s907_s24 = smov (!%p567_p10), 0  }
 0x100 LB: >> { %v404_v26 = vld [vmem:[%s770_s22] sm:$0xff]  ;;  %v406_v27 = vld [vmem:[%s770_s22 + $0x8] sm:$0xff]  ;;  %v408_v28 = vld [vmem:[%s770_s22 + $0x10] sm:$0xff]  ;;  %s414_s25 = sadd.s32 1, %s774_s23  ;;  %s398_s24 = sadd.s32 1, %s778_s24   ;;  %s778_s24 = sphi %s907_s24, %s398_s24   ;;  %s774_s23 = sphi %s905_s23, %s946_s23   ;;  %s770_s22 = sphi %s945_s22, %s419_s22   ;;  %s766_s15 = sphi %s944_s15, %s420_s15  }
 0x101   : >> { %405 = vst [vmem:[%s766_s15] sm:$0xff] %v404_v26  ;;  %407 = vst [vmem:[%s766_s15 + $0x8] sm:$0xff] %v406_v27  ;;  %v410_v29 = vld [vmem:[%s770_s22 + $0x18] sm:$0xff]  ;;  %v412_v30 = vld [vmem:[%s770_s22 + $0x20] sm:$0xff]  ;;  %p415_p11 = scmp.ge.s32.totalorder %s414_s25, %s896_s20  ;;  %p397_p12 = scmp.ge.s32.totalorder %s398_s24, %s896_s20 }
 0x102   : >> { %409 = vst [vmem:[%s766_s15 + $0x10] sm:$0xff] %v408_v28  ;;  %411 = vst [vmem:[%s766_s15 + $0x18] sm:$0xff] %v410_v29 }
 0x103   : >> { %413 = vst [vmem:[%s766_s15 + $0x20] sm:$0xff] %v412_v30  ;;  %s953_s25 = smov (%p415_p11, %s414_s25), 0  ;;  %400 = sbr.rel (!%p397_p12) target bundleno = 256 (0x100), region = 122 }
 0x104   : >> { %s417_s26 = smul.u32 40, %s953_s25  ;;  %s946_s23 = smov %s953_s25 }
 0x106   : >> { %s419_s22 = scalar_lea.vmem %s871_s10, %s417_s26 [#allocation2]   ;;  %s420_s15 = scalar_lea.vmem %s890_s18, %s417_s26  }
 0x108 PF: > { %706 = sdivrem.u32 %s951_s11, 5 }
 0x109   : > { %s568_s27 = smul.u32 40, %s896_s20 }
 0x10b   : > { %s425_s28 = scalar_lea.vmem %s871_s10, %s568_s27 [#allocation2]   ;;  %s427_s29 = scalar_lea.vmem %s890_s18, %s568_s27  }
 0x111   : > { %s707_s30 = spop.drf %706 }
 0x112   : > { %p570_p13 = scmp.le.s32.totalorder %s707_s30, 0 }
 0x113   : > { %s780_s4 = smov (!%p570_p13), %s427_s29   ;;  %s784_s5 = smov (!%p570_p13), %s425_s28  }
 0x114   : > { %518 = sbr.rel (%p570_p13) target bundleno = 289 (0x121), region = 127  ;;  %s788_s6 = smov (!%p570_p13), 0  }
 0x115   : > { %s792_s7 = smov (!%p570_p13), 0  }
 0x119 LB: >> { %v437_v31 = vld [vmem:[%s786_s5] sm:$0xff]  ;;  %s439_s8 = sadd.s32 1, %s790_s6  ;;  %s431_s7 = sadd.s32 1, %s794_s7   ;;  %s794_s7 = sphi %s792_s7, %s431_s7   ;;  %s790_s6 = sphi %s788_s6, %s789_s6   ;;  %s786_s5 = sphi %s784_s5, %s444_s5   ;;  %s782_s4 = sphi %s780_s4, %s445_s4  }
 0x11a   : >> { %438 = vst [vmem:[%s782_s4] sm:$0xff] %v437_v31  ;;  %p440_p0 = scmp.ge.s32.totalorder %s439_s8, %s707_s30  ;;  %p430_p1 = scmp.ge.s32.totalorder %s431_s7, %s707_s30 }
 0x11c   : >> { %s955_s8 = smov (%p440_p0, %s439_s8), 0  ;;  %433 = sbr.rel (!%p430_p1) target bundleno = 281 (0x119), region = 133 }
 0x11d   : >> { %s571_s9 = sshll.u32 %s955_s8, 3  ;;  %s789_s6 = smov %s955_s8  }
 0x11e   : >> { %s444_s5 = scalar_lea.vmem %s425_s28, %s571_s9 [#allocation2]   ;;  %s445_s4 = scalar_lea.vmem %s427_s29, %s571_s9  }
 0x121 PF: > { %p10_p2 = scmp.ge.s32.totalorder %s833_s16, 4   ;;  %s947_s12 = smov %s758_s13 }
 0x122   : > { %s948_s13 = smov %s841_s19  ;;  %s949_s14 = smov %s833_s16 }
 0x123   :  { %12 = sbr.rel (!%p10_p2) target bundleno = 2 (0x2), region = 144 }

</bundles_post_ra>
